<compile_context>
chip_gen: v7x
topology: tpu7x:2x2x1
jax: 0.10.0
libtpu: 0.0.40
codegen_flags: <defaults>
</compile_context>

<pallas_src>
import jax
import jax.numpy as jnp
from jax.experimental import pallas as pl
from jax.experimental.pallas import tpu as pltpu


def conv1x1_clamp_kernel(x_ref, w_ref, b_ref, o_ref):
    # x_ref: (N, Cin, M)   w_ref: (Cout, Cin)   b_ref: (Cout, 1)   o_ref: (N, Cout, M)
    N, Cout, M = o_ref.shape
    Cin = x_ref.shape[1]

    w = w_ref[...]                                        # (Cout, Cin), one tiny tile
    # Bias as accumulator init, hoisted out of both unrolled loops.
    bias_full = jnp.broadcast_to(b_ref[...], (Cout, M))   # (Cout, M) f32

    for n in range(N):                                    # static unroll over batch (N=2)
        x_n = x_ref[n]                                    # (Cin, M), lane-dense
        acc = bias_full
        # Unrolled VPU broadcast-FMAs over the 3 input channels (no MXU).
        for ci in range(Cin):
            acc = acc + w[:, ci:ci + 1] * x_n[ci:ci + 1, :]   # (Cout,1)*(1,M) -> (Cout,M)
        # clamp_max at 21.0
        o_ref[n] = jnp.minimum(acc, jnp.float32(21.0)).astype(o_ref.dtype)


def conv1x1_clamp(x_flat, w_mat, b_col):
    """x_flat: (N, Cin, M)  w_mat: (Cout, Cin)  b_col: (Cout, 1) -> (N, Cout, M)."""
    N, Cin, M = x_flat.shape
    Cout = w_mat.shape[0]
    return pl.pallas_call(
        conv1x1_clamp_kernel,
        out_shape=jax.ShapeDtypeStruct((N, Cout, M), x_flat.dtype),
        grid_spec=pltpu.PrefetchScalarGridSpec(
            num_scalar_prefetch=0,
            grid=(1,),                                    # single step: whole batch at once
            in_specs=[
                pl.BlockSpec((N, Cin, M), lambda i: (0, 0, 0)),
                pl.BlockSpec((Cout, Cin), lambda i: (0, 0)),
                pl.BlockSpec((Cout, 1), lambda i: (0, 0)),
            ],
            out_specs=pl.BlockSpec((N, Cout, M), lambda i: (0, 0, 0)),
        ),
        compiler_params=pltpu.CompilerParams(dimension_semantics=("arbitrary",)),
    )(x_flat, w_mat, b_col)


def model1_forward(x1, weight, bias, *, padding=4):
    """x1: (N, Cin, H, W) NCHW; weight: (Cout, Cin, 1, 1); bias: (Cout,)."""
    N, Cin, H, W = x1.shape
    Cout = weight.shape[0]
    Hp, Wp = H + 2 * padding, W + 2 * padding

    # 1x1 conv with zero padding: padded pixels become exactly `bias`, so a
    # spatial zero-pad of the (tiny) NCHW input + per-pixel FMA is exact.
    # Stays NCHW end-to-end (no layout transposes).
    x_pad = jnp.pad(x1, ((0, 0), (0, 0), (padding, padding), (padding, padding)))
    x_flat = x_pad.reshape(N, Cin, Hp * Wp)              # free contiguous collapse

    w_mat = weight.reshape(Cout, Cin)                     # (Cout, Cin)
    b_col = bias.reshape(Cout, 1)                         # (Cout, 1)

    y = conv1x1_clamp(x_flat, w_mat, b_col)               # (N, Cout, Hp*Wp)
    return y.reshape(N, Cout, Hp, Wp)                     # free reshape, stays NCHW


if __name__ == "__main__":
    key = jax.random.PRNGKey(0)
    k_x, k_w, k_b = jax.random.split(key, 3)

    N, Cin, H, W = 2, 3, 16, 16
    Cout = 13

    # Deterministic parameter init (uniform in +-1/sqrt(fan_in), PyTorch-like).
    fan_in = Cin * 1 * 1
    bound = 1.0 / (fan_in ** 0.5)
    weight = jax.random.uniform(k_w, (Cout, Cin, 1, 1), jnp.float32, -bound, bound)
    bias = jax.random.uniform(k_b, (Cout,), jnp.float32, -bound, bound)

    x1 = jax.random.normal(k_x, (N, Cin, H, W), jnp.float32) * 30.0  # exercise the clamp
    x2 = jax.random.normal(jax.random.PRNGKey(1), (N, Cin, H, W), jnp.float32)  # unused by forward

    # One jitted program: pad + pallas kernel + reshapes dispatch together.
    fwd = jax.jit(model1_forward)
    out = fwd(x1, weight, bias)
    out = jax.block_until_ready(out)

    # Reference check (plain JAX conv + clamp).
    ref = jax.lax.conv_general_dilated(
        x1, weight, window_strides=(1, 1), padding=[(4, 4), (4, 4)],
        dimension_numbers=("NCHW", "OIHW", "NCHW"))
    ref = jnp.minimum(ref + bias[None, :, None, None], 21.0)
    assert out.shape == (N, Cout, H + 8, W + 8)
    assert jnp.allclose(out, ref, atol=1e-5, rtol=1e-5)

    print("KERNEL_OK")
</pallas_src>

<mosaic_0001>
module attributes {stable_mosaic.version = 11 : i64} {
  func.func @conv1x1_clamp_kernel(%arg0: i32, %arg1: memref<2x3x576xf32, #tpu.memory_space<vmem>>, %arg2: memref<13x3xf32, #tpu.memory_space<vmem>>, %arg3: memref<13x1xf32, #tpu.memory_space<vmem>>, %arg4: memref<2x13x576xf32, #tpu.memory_space<vmem>>) attributes {dimension_semantics = [#tpu.dimension_semantics<arbitrary>], iteration_bounds = array<i64: 1>, scalar_prefetch = 0 : i64, scratch_operands = 0 : i64, tpu.core_type = #tpu.core_type<tc>, window_params = [{pipeline_mode = #tpu.pipeline_mode<synchronous>, transform_indices = @transform_0, window_bounds = array<i64: 2, 3, 576>}, {pipeline_mode = #tpu.pipeline_mode<synchronous>, transform_indices = @transform_1, window_bounds = array<i64: 13, 3>}, {pipeline_mode = #tpu.pipeline_mode<synchronous>, transform_indices = @transform_2, window_bounds = array<i64: 13, 1>}, {pipeline_mode = #tpu.pipeline_mode<synchronous>, transform_indices = @transform_3, window_bounds = array<i64: 2, 13, 576>}]} {
    %c0 = arith.constant 0 : index
    %c0_0 = arith.constant 0 : index
    %0 = vector.load %arg2[%c0, %c0_0] : memref<13x3xf32, #tpu.memory_space<vmem>>, vector<13x3xf32>
    %c0_1 = arith.constant 0 : index
    %c0_2 = arith.constant 0 : index
    %1 = vector.load %arg3[%c0_1, %c0_2] : memref<13x1xf32, #tpu.memory_space<vmem>>, vector<13x1xf32>
    %2 = vector.shape_cast %1 : vector<13x1xf32> to vector<13x1xf32>
    %3 = vector.broadcast %2 : vector<13x1xf32> to vector<13x576xf32>
    %c0_3 = arith.constant 0 : index
    %c0_4 = arith.constant 0 : index
    %c0_5 = arith.constant 0 : index
    %4 = vector.load %arg1[%c0_3, %c0_4, %c0_5] : memref<2x3x576xf32, #tpu.memory_space<vmem>>, vector<1x3x576xf32>
    %5 = vector.shape_cast %4 : vector<1x3x576xf32> to vector<3x576xf32>
    %6 = vector.extract_strided_slice %0 {offsets = [0, 0], sizes = [13, 1], strides = [1, 1]} : vector<13x3xf32> to vector<13x1xf32>
    %7 = vector.extract_strided_slice %5 {offsets = [0, 0], sizes = [1, 576], strides = [1, 1]} : vector<3x576xf32> to vector<1x576xf32>
    %8 = vector.broadcast %6 : vector<13x1xf32> to vector<13x576xf32>
    %9 = vector.broadcast %7 : vector<1x576xf32> to vector<13x576xf32>
    %10 = arith.mulf %8, %9 : vector<13x576xf32>
    %11 = arith.addf %3, %10 : vector<13x576xf32>
    %12 = vector.extract_strided_slice %0 {offsets = [0, 1], sizes = [13, 1], strides = [1, 1]} : vector<13x3xf32> to vector<13x1xf32>
    %13 = vector.extract_strided_slice %5 {offsets = [1, 0], sizes = [1, 576], strides = [1, 1]} : vector<3x576xf32> to vector<1x576xf32>
    %14 = vector.broadcast %12 : vector<13x1xf32> to vector<13x576xf32>
    %15 = vector.broadcast %13 : vector<1x576xf32> to vector<13x576xf32>
    %16 = arith.mulf %14, %15 : vector<13x576xf32>
    %17 = arith.addf %11, %16 : vector<13x576xf32>
    %18 = vector.extract_strided_slice %0 {offsets = [0, 2], sizes = [13, 1], strides = [1, 1]} : vector<13x3xf32> to vector<13x1xf32>
    %19 = vector.extract_strided_slice %5 {offsets = [2, 0], sizes = [1, 576], strides = [1, 1]} : vector<3x576xf32> to vector<1x576xf32>
    %20 = vector.broadcast %18 : vector<13x1xf32> to vector<13x576xf32>
    %21 = vector.broadcast %19 : vector<1x576xf32> to vector<13x576xf32>
    %22 = arith.mulf %20, %21 : vector<13x576xf32>
    %23 = arith.addf %17, %22 : vector<13x576xf32>
    %cst = arith.constant 2.100000e+01 : f32
    %24 = vector.broadcast %cst : f32 to vector<13x576xf32>
    %25 = arith.minimumf %23, %24 : vector<13x576xf32>
    %c0_6 = arith.constant 0 : index
    %c0_7 = arith.constant 0 : index
    %c0_8 = arith.constant 0 : index
    %26 = vector.load %arg4[%c0_6, %c0_7, %c0_8] : memref<2x13x576xf32, #tpu.memory_space<vmem>>, vector<1x13x576xf32>
    %27 = vector.shape_cast %26 : vector<1x13x576xf32> to vector<13x576xf32>
    %28 = vector.shape_cast %25 : vector<13x576xf32> to vector<1x13x576xf32>
    tpu.vector_store %arg4[%c0_6, %c0_7, %c0_8], %28 {strides = array<i32>} : memref<2x13x576xf32, #tpu.memory_space<vmem>>, vector<1x13x576xf32>,
    %c1 = arith.constant 1 : index
    %c0_9 = arith.constant 0 : index
    %c0_10 = arith.constant 0 : index
    %29 = vector.load %arg1[%c1, %c0_9, %c0_10] : memref<2x3x576xf32, #tpu.memory_space<vmem>>, vector<1x3x576xf32>
    %30 = vector.shape_cast %29 : vector<1x3x576xf32> to vector<3x576xf32>
    %31 = vector.extract_strided_slice %0 {offsets = [0, 0], sizes = [13, 1], strides = [1, 1]} : vector<13x3xf32> to vector<13x1xf32>
    %32 = vector.extract_strided_slice %30 {offsets = [0, 0], sizes = [1, 576], strides = [1, 1]} : vector<3x576xf32> to vector<1x576xf32>
    %33 = vector.broadcast %31 : vector<13x1xf32> to vector<13x576xf32>
    %34 = vector.broadcast %32 : vector<1x576xf32> to vector<13x576xf32>
    %35 = arith.mulf %33, %34 : vector<13x576xf32>
    %36 = arith.addf %3, %35 : vector<13x576xf32>
    %37 = vector.extract_strided_slice %0 {offsets = [0, 1], sizes = [13, 1], strides = [1, 1]} : vector<13x3xf32> to vector<13x1xf32>
    %38 = vector.extract_strided_slice %30 {offsets = [1, 0], sizes = [1, 576], strides = [1, 1]} : vector<3x576xf32> to vector<1x576xf32>
    %39 = vector.broadcast %37 : vector<13x1xf32> to vector<13x576xf32>
    %40 = vector.broadcast %38 : vector<1x576xf32> to vector<13x576xf32>
    %41 = arith.mulf %39, %40 : vector<13x576xf32>
    %42 = arith.addf %36, %41 : vector<13x576xf32>
    %43 = vector.extract_strided_slice %0 {offsets = [0, 2], sizes = [13, 1], strides = [1, 1]} : vector<13x3xf32> to vector<13x1xf32>
    %44 = vector.extract_strided_slice %30 {offsets = [2, 0], sizes = [1, 576], strides = [1, 1]} : vector<3x576xf32> to vector<1x576xf32>
    %45 = vector.broadcast %43 : vector<13x1xf32> to vector<13x576xf32>
    %46 = vector.broadcast %44 : vector<1x576xf32> to vector<13x576xf32>
    %47 = arith.mulf %45, %46 : vector<13x576xf32>
    %48 = arith.addf %42, %47 : vector<13x576xf32>
    %cst_11 = arith.constant 2.100000e+01 : f32
    %49 = vector.broadcast %cst_11 : f32 to vector<13x576xf32>
    %50 = arith.minimumf %48, %49 : vector<13x576xf32>
    %c1_12 = arith.constant 1 : index
    %c0_13 = arith.constant 0 : index
    %c0_14 = arith.constant 0 : index
    %51 = vector.load %arg4[%c1_12, %c0_13, %c0_14] : memref<2x13x576xf32, #tpu.memory_space<vmem>>, vector<1x13x576xf32>
    %52 = vector.shape_cast %51 : vector<1x13x576xf32> to vector<13x576xf32>
    %53 = vector.shape_cast %50 : vector<13x576xf32> to vector<1x13x576xf32>
    tpu.vector_store %arg4[%c1_12, %c0_13, %c0_14], %53 {strides = array<i32>} : memref<2x13x576xf32, #tpu.memory_space<vmem>>, vector<1x13x576xf32>,
    return
  }
  func.func @transform_0(%arg0: i32) -> (i32, i32, i32) {
    %c0_i32 = arith.constant 0 : i32
    %c0_i32_0 = arith.constant 0 : i32
    %c0_i32_1 = arith.constant 0 : i32
    %c0_i32_2 = arith.constant 0 : i32
    return %c0_i32, %c0_i32_0, %c0_i32_1 : i32, i32, i32
  }
  func.func @transform_1(%arg0: i32) -> (i32, i32) {
    %c0_i32 = arith.constant 0 : i32
    %c0_i32_0 = arith.constant 0 : i32
    %c0_i32_1 = arith.constant 0 : i32
    return %c0_i32, %c0_i32_0 : i32, i32
  }
  func.func @transform_2(%arg0: i32) -> (i32, i32) {
    %c0_i32 = arith.constant 0 : i32
    %c0_i32_0 = arith.constant 0 : i32
    %c0_i32_1 = arith.constant 0 : i32
    return %c0_i32, %c0_i32_0 : i32, i32
  }
  func.func @transform_3(%arg0: i32) -> (i32, i32, i32) {
    %c0_i32 = arith.constant 0 : i32
    %c0_i32_0 = arith.constant 0 : i32
    %c0_i32_1 = arith.constant 0 : i32
    %c0_i32_2 = arith.constant 0 : i32
    return %c0_i32, %c0_i32_0, %c0_i32_1 : i32, i32, i32
  }
}

</mosaic_0001>

<bundles_post_ra>
// kernel: model1_forward.1
= control target key start
LH: loop header
LB: loop body
LE: loop exit
PB: predicated region body
PF: predicated region fallthrough
CT: control target
= control target key end

     0   :  { %v526_v0 = vmov 0   ;;  %v527_v5 = vmov 1   ;;  %v528_v6 = vmov 2   ;;  %v44_v7 = vlaneseq  ;;  %s878_s2 = inlined_call_operand.vmem [shape: f32[13,1], index: 2, kind: input, shape index: {}]   ;;  %s879_s1 = inlined_call_operand.vmem [shape: f32[13,3], index: 1, kind: input, shape index: {}]   ;;  %s880_s0 = inlined_call_operand.vmem [shape: f32[2,3,576], index: 0, kind: input, shape index: {}]   ;;  %s881_s3 = inlined_call_operand.vmem [shape: f32[2,13,576], index: 3, kind: output, shape index: {}]  }
   0x1   :  { %521 = vset.pattern.permute.xlu1 %v526_v0  ;;  %520 = vset.pattern.permute.xlu0 %v526_v0  ;;  %v16_v1 = vld [vmem:[%s878_s2] sm:$0xff]  ;;  %v17_v3 = vld [vmem:[%s878_s2 + $0x8] sm:$0x1f]  ;;  %v572_v13 = vld [vmem:[%s880_s0 + $0x10] sm:$0x7]  ;;  %vm269_vm0 = vcmask 523264  }
   0x2   :  { %v14_v2 = vld [vmem:[%s879_s1] sm:$0xff]  ;;  %20 = vperm.xlu1 %521, %v16_v1   ;;  %v15_v4 = vld [vmem:[%s879_s1 + $0x8] sm:$0x1f]  ;;  %v45_v8 = vshrl.u32 %v44_v7, 7  ;;  %v577_v15 = vld [vmem:[%s880_s0 + $0x14] sm:$0x77] }
   0x3   :  { %33 = vperm.xlu0 %520, %v14_v2   ;;  %v28_v11 = vld [vmem:[%s880_s0] sm:$0x77]  ;;  %v567_v12 = vld [vmem:[%s880_s0 + $0x8] sm:$0x77]  ;;  %vm275_vm1 = vcmask 520192  }
   0x4   :  { %v46_v9 = vsub.s32 0, %v45_v8  ;;  %v50_v10 = vsub.s32 4, %v45_v8  ;;  %v119_v14 = vsub.s32 1, %v45_v8  ;;  %v582_v16 = vld [vmem:[%s880_s0 + $0x1c] sm:$0x77]  ;;  %v123_v21 = vsub.s32 5, %v45_v8 }
   0x5   :  { %v588_v20 = vld [vmem:[%s880_s0 + $0x24] sm:$0x7]  ;;  %v192_v27 = vsub.s32 2, %v45_v8  ;;  %v196_v42 = vsub.s32 6, %v45_v8 }
   0x6   :  { %25 = vperm.xlu1 %521, %v17_v3   ;;  %v47_v17 = vrot.slane %v28_v11, %v46_v9  ;;  %v51_v18 = vrot.slane %v28_v11, %v50_v10  ;;  %v55_v19 = vrot.slane %v567_v12, %v46_v9  ;;  %v59_v22 = vrot.slane %v567_v12, %v50_v10 }
   0x7   :  { %38 = vperm.xlu0 %520, %v15_v4   ;;  %v63_v23 = vrot.slane %v572_v13, %v46_v9  ;;  %v287_v24 = vrot.slane %v577_v15, %v46_v9  ;;  %v291_v25 = vrot.slane %v577_v15, %v50_v10  ;;  %v295_v26 = vrot.slane %v582_v16, %v46_v9 }
   0x8   :  { %v299_v28 = vrot.slane %v582_v16, %v50_v10  ;;  %v303_v29 = vrot.slane %v588_v20, %v46_v9  ;;  %v120_v30 = vrot.slane %v28_v11, %v119_v14  ;;  %v597_v31 = vrot.slane %v47_v17, %v46_v9 }
   0x9   :  { %v599_v32 = vrot.slane %v51_v18, %v46_v9  ;;  %v601_v33 = vrot.slane %v55_v19, %v46_v9  ;;  %v124_v34 = vrot.slane %v28_v11, %v123_v21  ;;  %v603_v35 = vrot.slane %v59_v22, %v46_v9 }
   0xa   :  { %523 = vset.pattern.permute.xlu1 %v527_v5  ;;  %v605_v36 = vrot.slane %v63_v23, %v46_v9  ;;  %v128_v37 = vrot.slane %v567_v12, %v119_v14  ;;  %v132_v38 = vrot.slane %v567_v12, %v123_v21  ;;  %v609_v39 = vrot.slane %v287_v24, %v46_v9 }
   0xb   :  { %522 = vset.pattern.permute.xlu0 %v527_v5  ;;  %114 = vperm.xlu1 %523, %v15_v4   ;;  %v611_v40 = vrot.slane %v291_v25, %v46_v9  ;;  %v613_v41 = vrot.slane %v295_v26, %v46_v9  ;;  %v615_v43 = vrot.slane %v299_v28, %v46_v9 }
   0xc   :  { %110 = vperm.xlu0 %522, %v14_v2   ;;  %v617_v44 = vrot.slane %v303_v29, %v46_v9  ;;  %v136_v45 = vrot.slane %v572_v13, %v119_v14  ;;  %v620_v46 = vrot.slane %v120_v30, %v119_v14  ;;  %v622_v47 = vrot.slane %v124_v34, %v119_v14 }
   0xd   :  { %v352_v48 = vrot.slane %v577_v15, %v119_v14  ;;  %v356_v49 = vrot.slane %v577_v15, %v123_v21  ;;  %v360_v50 = vrot.slane %v582_v16, %v119_v14  ;;  %v627_v51 = vrot.slane %v128_v37, %v119_v14 }
   0xe   :  { %v629_v52 = vrot.slane %v132_v38, %v119_v14  ;;  %v364_v53 = vrot.slane %v582_v16, %v123_v21  ;;  %v368_v54 = vrot.slane %v588_v20, %v119_v14  ;;  %v193_v55 = vrot.slane %v28_v11, %v192_v27 }
   0xf   :  { %524 = vset.pattern.permute.xlu1 %v528_v6  ;;  %v197_v56 = vrot.slane %v28_v11, %v196_v42  ;;  %v201_v57 = vrot.slane %v567_v12, %v192_v27  ;;  %v205_v58 = vrot.slane %v567_v12, %v196_v42  ;;  %v209_v59 = vrot.slane %v572_v13, %v192_v27 }
  0x10   :  { %525 = vset.pattern.permute.xlu0 %v528_v6  ;;  %183 = vperm.xlu1 %524, %v14_v2   ;;  %v417_v60 = vrot.slane %v577_v15, %v192_v27  ;;  %v421_v61 = vrot.slane %v577_v15, %v196_v42  ;;  %v425_v62 = vrot.slane %v582_v16, %v192_v27 }
  0x11   :  { %187 = vperm.xlu0 %525, %v15_v4   ;;  %v639_v63 = vrot.slane %v136_v45, %v119_v14  ;;  %v641_v0 = vrot.slane %v352_v48, %v119_v14  ;;  %v643_v1 = vrot.slane %v356_v49, %v119_v14  ;;  %v645_v2 = vrot.slane %v360_v50, %v119_v14 }
  0x12   :  { %v647_v3 = vrot.slane %v364_v53, %v119_v14  ;;  %v649_v4 = vrot.slane %v368_v54, %v119_v14  ;;  %v429_v5 = vrot.slane %v582_v16, %v196_v42  ;;  %v433_v6 = vrot.slane %v588_v20, %v192_v27 }
  0x13   :  { %v653_v7 = vrot.slane %v193_v55, %v192_v27  ;;  %v655_v8 = vrot.slane %v197_v56, %v192_v27  ;;  %v657_v9 = vrot.slane %v201_v57, %v192_v27  ;;  %v659_v10 = vrot.slane %v205_v58, %v192_v27 }
  0x14   :  { %v661_v13 = vrot.slane %v209_v59, %v192_v27  ;;  %v663_v15 = vrot.slane %v417_v60, %v192_v27  ;;  %v665_v14 = vrot.slane %v421_v61, %v192_v27  ;;  %v667_v17 = vrot.slane %v425_v62, %v192_v27 }
  0x15   :  { %v675_v23 = vrot.slane %v429_v5, %v192_v27  ;;  %v677_v24 = vrot.slane %v433_v6, %v192_v27 }
  0x81   :  { %v21_v11 = vpop.permute.xlu1 %20 }
  0x82   :  { %v34_v12 = vpop.permute.xlu0 %33 }
  0x83   :  { %v89_v16 = vmul.f32 %v597_v31, %v34_v12  ;;  %v90_v18 = vmul.f32 %v599_v32, %v34_v12  ;;  %v91_v19 = vmul.f32 %v601_v33, %v34_v12  ;;  %v92_v20 = vmul.f32 %v603_v35, %v34_v12 }
  0x84   :  { %v93_v21 = vmul.f32 %v605_v36, %v34_v12  ;;  %v329_v22 = vmul.f32 %v609_v39, %v34_v12  ;;  %v330_v25 = vmul.f32 %v611_v40, %v34_v12  ;;  %v331_v26 = vmul.f32 %v613_v41, %v34_v12 }
  0x85   :  { %v332_v28 = vmul.f32 %v615_v43, %v34_v12  ;;  %v333_v29 = vmul.f32 %v617_v44, %v34_v12  ;;  %v683_v30 = vpop.permute.xlu1 %25  ;;  %v99_v37 = vadd.f32 %v89_v16, %v21_v11  ;;  %v100_v38 = vadd.f32 %v90_v18, %v21_v11 }
  0x86   :  { %v39_v34 = vpop.permute.xlu0 %38  ;;  %v101_v42 = vadd.f32 %v91_v19, %v21_v11  ;;  %v102_v45 = vadd.f32 %v92_v20, %v21_v11  ;;  %v103_v55 = vadd.f32 %v93_v21, %v21_v11  ;;  %v339_v56 = vadd.f32 %v329_v22, %v21_v11 }
  0x87   :  { %v94_v48 = vmul.f32 %v597_v31, %v39_v34  ;;  %v95_v27 = vmul.f32 %v599_v32, %v39_v34  ;;  %v96_v49 = vmul.f32 %v601_v33, %v39_v34  ;;  %v97_v50 = vmul.f32 %v603_v35, %v39_v34 }
  0x88   :  { %v98_v53 = vmul.f32 %v605_v36, %v39_v34  ;;  %v334_v54 = vmul.f32 %v609_v39, %v39_v34  ;;  %v692_v57 = vmul.f32 %v611_v40, %v39_v34  ;;  %v695_v58 = vmul.f32 %v613_v41, %v39_v34 }
  0x89   :  { %v698_v31 = vmul.f32 %v615_v43, %v39_v34  ;;  %v701_v32 = vmul.f32 %v617_v44, %v39_v34  ;;  %v340_v33 = vadd.f32 %v330_v25, %v21_v11  ;;  %v341_v35 = vadd.f32 %v331_v26, %v21_v11 }
  0x8a   :  { %v342_v59 = vadd.f32 %v332_v28, %v21_v11  ;;  %v343_v36 = vadd.f32 %v333_v29, %v21_v11  ;;  %v703_v60 = vpop.permute.xlu1 %114  ;;  %v706_v61 = vadd.f32 %v94_v48, %v683_v30  ;;  %v709_v40 = vadd.f32 %v95_v27, %v683_v30 }
  0x8b   :  { %882 = vst [vmem:[#allocation2_spill] sm:$0xff] %v701_v32  ;;  %v111_v39 = vpop.permute.xlu0 %110  ;;  %v712_v41 = vadd.f32 %v96_v49, %v683_v30  ;;  %v715_v43 = vadd.f32 %v97_v50, %v683_v30  ;;  %v719_v44 = vmul.f32 %v620_v46, %v703_v60  ;;  %v723_v62 = vmul.f32 %v622_v47, %v703_v60 }
  0x8c   :  { %v726_v5 = vadd.f32 %v98_v53, %v683_v30  ;;  %v729_v6 = vadd.f32 %v334_v54, %v683_v30  ;;  %v733_v11 = vmul.f32 %v627_v51, %v703_v60  ;;  %v737_v12 = vmul.f32 %v629_v52, %v703_v60 }
  0x8d   :  { %v741_v16 = vmul.f32 %v639_v63, %v703_v60  ;;  %v745_v18 = vmul.f32 %v641_v0, %v703_v60  ;;  %v749_v19 = vmul.f32 %v643_v1, %v703_v60  ;;  %v753_v20 = vmul.f32 %v645_v2, %v703_v60 }
  0x8e   :  { %883 = vst [vmem:[#allocation3_spill] sm:$0xff] %v729_v6  ;;  %v162_v21 = vmul.f32 %v620_v46, %v111_v39  ;;  %v163_v22 = vmul.f32 %v622_v47, %v111_v39  ;;  %v164_v25 = vmul.f32 %v627_v51, %v111_v39  ;;  %v165_v26 = vmul.f32 %v629_v52, %v111_v39 }
  0x8f   :  { %884 = vst [vmem:[#allocation4_spill] sm:$0xff] %v745_v18  ;;  %885 = vst [vmem:[#allocation5_spill] sm:$0xff] %v749_v19  ;;  %v166_v28 = vmul.f32 %v639_v63, %v111_v39  ;;  %v394_v29 = vmul.f32 %v641_v0, %v111_v39  ;;  %v763_v34 = vmul.f32 %v647_v3, %v703_v60  ;;  %v184_v47 = vpop.permute.xlu1 %183 }
  0x90   :  { %886 = vst [vmem:[#allocation6_spill] sm:$0xff] %v753_v20  ;;  %v395_v48 = vmul.f32 %v643_v1, %v111_v39  ;;  %v396_v27 = vmul.f32 %v645_v2, %v111_v39  ;;  %v397_v46 = vmul.f32 %v647_v3, %v111_v39  ;;  %v398_v49 = vmul.f32 %v649_v4, %v111_v39 }
  0x91   :  { %887 = vst [vmem:[#allocation7_spill] sm:$0xff] %v763_v34  ;;  %v172_v51 = vadd.f32 %v162_v21, %v99_v37  ;;  %v173_v50 = vadd.f32 %v163_v22, %v100_v38  ;;  %v174_v52 = vadd.f32 %v164_v25, %v101_v42  ;;  %v175_v53 = vadd.f32 %v165_v26, %v102_v45 }
  0x92   :  { %v235_v63 = vmul.f32 %v653_v7, %v184_v47  ;;  %v236_v0 = vmul.f32 %v655_v8, %v184_v47  ;;  %v237_v54 = vmul.f32 %v657_v9, %v184_v47  ;;  %v176_v34 = vadd.f32 %v166_v28, %v103_v55 }
  0x93   :  { %v238_v1 = vmul.f32 %v659_v10, %v184_v47  ;;  %v239_v2 = vmul.f32 %v661_v13, %v184_v47  ;;  %v404_v20 = vadd.f32 %v394_v29, %v339_v56  ;;  %v405_v39 = vadd.f32 %v395_v48, %v340_v33 }
  0x94   :  { %v245_v3 = vadd.f32 %v235_v63, %v172_v51  ;;  %v246_v19 = vadd.f32 %v236_v0, %v173_v50  ;;  %v247_v18 = vadd.f32 %v237_v54, %v174_v52  ;;  %v406_v42 = vadd.f32 %v396_v27, %v341_v35  ;;  %v888_v52 = vld [vmem:[#allocation2_spill] sm:$0xff] }
  0x95   :  { %v248_v37 = vadd.f32 %v238_v1, %v175_v53  ;;  %v249_v38 = vadd.f32 %v239_v2, %v176_v34  ;;  %v407_v45 = vadd.f32 %v397_v46, %v342_v59  ;;  %v459_v26 = vmul.f32 %v663_v15, %v184_v47 }
  0x96   :  { %v255_v21 = vmin.f32 %v245_v3, 21.0  ;;  %v256_v22 = vmin.f32 %v246_v19, 21.0  ;;  %v257_v25 = vmin.f32 %v247_v18, 21.0  ;;  %v460_v28 = vmul.f32 %v665_v14, %v184_v47  ;;  %v188_v18 = vpop.permute.xlu0 %187  ;;  %v890_v54 = vld [vmem:[#allocation4_spill] sm:$0xff]  ;;  %v891_v2 = vld [vmem:[#allocation5_spill] sm:$0xff] }
  0x97   :  { %v258_v6 = vmin.f32 %v248_v37, 21.0  ;;  %v259_v55 = vmin.f32 %v249_v38, 21.0  ;;  %v461_v32 = vmul.f32 %v667_v17, %v184_v47  ;;  %v408_v56 = vadd.f32 %v398_v49, %v343_v36 }
  0x98   :  { %265 = vst [vmem:[%s881_s3] sm:$0xff] %v255_v21  ;;  %266 = vst [vmem:[%s881_s3 + $0x8] sm:$0xff] %v256_v22  ;;  %v462_v33 = vmul.f32 %v675_v23, %v184_v47  ;;  %v463_v35 = vmul.f32 %v677_v24, %v184_v47  ;;  %v469_v59 = vadd.f32 %v459_v26, %v404_v20  ;;  %v893_v38 = vld [vmem:[#allocation7_spill] sm:$0xff] }
  0x99   :  { %267 = vst [vmem:[%s881_s3 + $0x10] sm:$0xff] %v257_v25  ;;  %268 = vst [vmem:[%s881_s3 + $0x18] sm:$0xff] %v258_v6  ;;  %v470_v19 = vadd.f32 %v460_v28, %v405_v39  ;;  %v471_v29 = vadd.f32 %v461_v32, %v406_v42  ;;  %v177_v36 = vadd.f32 %v719_v44, %v706_v61 }
  0x9a   :  { %270 = vst.msk [vmem:[%s881_s3 + $0x20] sm:$0xff] %vm269_vm0, %v259_v55  ;;  %v178_v34 = vadd.f32 %v723_v62, %v709_v40  ;;  %v472_v20 = vadd.f32 %v462_v33, %v407_v45  ;;  %v473_v48 = vadd.f32 %v463_v35, %v408_v56  ;;  %v479_v27 = vmin.f32 %v469_v59, 21.0 }
  0x9b   :  { %v179_v46 = vadd.f32 %v733_v11, %v712_v41  ;;  %v480_v6 = vmin.f32 %v470_v19, 21.0  ;;  %v481_v47 = vmin.f32 %v471_v29, 21.0  ;;  %v180_v49 = vadd.f32 %v737_v12, %v715_v43 }
  0x9c   :  { %v240_v51 = vmul.f32 %v653_v7, %v188_v18  ;;  %v482_v32 = vmin.f32 %v472_v20, 21.0  ;;  %v483_v50 = vmin.f32 %v473_v48, 21.0  ;;  %507 = vst [vmem:[%s881_s3 + $0x50] sm:$0xff] %v479_v27  ;;  %v241_v61 = vmul.f32 %v655_v8, %v188_v18 }
  0x9d   :  { %v242_v40 = vmul.f32 %v657_v9, %v188_v18  ;;  %508 = vst [vmem:[%s881_s3 + $0x58] sm:$0xff] %v480_v6  ;;  %509 = vst [vmem:[%s881_s3 + $0x60] sm:$0xff] %v481_v47  ;;  %v181_v7 = vadd.f32 %v741_v16, %v726_v5  ;;  %v243_v41 = vmul.f32 %v659_v10, %v188_v18 }
  0x9e   :  { %v244_v43 = vmul.f32 %v661_v13, %v188_v18  ;;  %v250_v44 = vadd.f32 %v240_v51, %v177_v36  ;;  %v403_v8 = vmul.f32 %v649_v4, %v703_v60  ;;  %510 = vst [vmem:[%s881_s3 + $0x68] sm:$0xff] %v482_v32  ;;  %511 = vst.msk [vmem:[%s881_s3 + $0x70] sm:$0xff] %vm269_vm0, %v483_v50 }
  0x9f   :  { %v251_v9 = vadd.f32 %v241_v61, %v178_v34  ;;  %v252_v62 = vadd.f32 %v242_v40, %v179_v46  ;;  %v345_v10 = vadd.f32 %v692_v57, %v683_v30  ;;  %v253_v5 = vadd.f32 %v243_v41, %v180_v49  ;;  %v889_v57 = vld [vmem:[#allocation3_spill] sm:$0xff] }
  0xa0   :  { %v254_v13 = vadd.f32 %v244_v43, %v181_v7  ;;  %v260_v11 = vmin.f32 %v250_v44, 21.0  ;;  %v346_v4 = vadd.f32 %v695_v58, %v683_v30  ;;  %v347_v16 = vadd.f32 %v698_v31, %v683_v30 }
  0xa1   :  { %v261_v60 = vmin.f32 %v251_v9, 21.0  ;;  %v262_v12 = vmin.f32 %v252_v62, 21.0  ;;  %v348_v53 = vadd.f32 %v888_v52, %v683_v30  ;;  %v263_v63 = vmin.f32 %v253_v5, 21.0  ;;  %v892_v30 = vld [vmem:[#allocation6_spill] sm:$0xff] }
  0xa2   :  { %v264_v0 = vmin.f32 %v254_v13, 21.0  ;;  %271 = vst [vmem:[%s881_s3 + $0x28] sm:$0x1f] %v260_v11  ;;  %v409_v1 = vadd.f32 %v890_v54, %v889_v57  ;;  %v410_v3 = vadd.f32 %v891_v2, %v345_v10  ;;  %v411_v58 = vadd.f32 %v892_v30, %v346_v4 }
  0xa3   :  { %272 = vst [vmem:[%s881_s3 + $0x30] sm:$0x1f] %v261_v60  ;;  %273 = vst [vmem:[%s881_s3 + $0x38] sm:$0x1f] %v262_v12  ;;  %v464_v31 = vmul.f32 %v663_v15, %v188_v18  ;;  %v465_v39 = vmul.f32 %v665_v14, %v188_v18  ;;  %v466_v37 = vmul.f32 %v667_v17, %v188_v18 }
  0xa4   :  { %274 = vst [vmem:[%s881_s3 + $0x40] sm:$0x1f] %v263_v63  ;;  %276 = vst.msk [vmem:[%s881_s3 + $0x48] sm:$0x1f] %vm275_vm1, %v264_v0  ;;  %v412_v42 = vadd.f32 %v893_v38, %v347_v16  ;;  %v413_v45 = vadd.f32 %v403_v8, %v348_v53  ;;  %v467_v21 = vmul.f32 %v675_v23, %v188_v18 }
  0xa5   :  { %v468_v15 = vmul.f32 %v677_v24, %v188_v18  ;;  %v474_v22 = vadd.f32 %v464_v31, %v409_v1  ;;  %v475_v14 = vadd.f32 %v465_v39, %v410_v3  ;;  %v476_v25 = vadd.f32 %v466_v37, %v411_v58 }
  0xa6   :  { %v477_v17 = vadd.f32 %v467_v21, %v412_v42 }
  0xa7   :  { %v478_v26 = vadd.f32 %v468_v15, %v413_v45  ;;  %v484_v55 = vmin.f32 %v474_v22, 21.0  ;;  %v485_v28 = vmin.f32 %v475_v14, 21.0  ;;  %v486_v56 = vmin.f32 %v476_v25, 21.0 }
  0xa8   :  { %v487_v33 = vmin.f32 %v477_v17, 21.0 }
  0xa9   :  { %v488_v35 = vmin.f32 %v478_v26, 21.0  ;;  %512 = vst [vmem:[%s881_s3 + $0x78] sm:$0x1f] %v484_v55  ;;  %513 = vst [vmem:[%s881_s3 + $0x80] sm:$0x1f] %v485_v28 }
  0xaa   :  { %514 = vst [vmem:[%s881_s3 + $0x88] sm:$0x1f] %v486_v56  ;;  %515 = vst [vmem:[%s881_s3 + $0x90] sm:$0x1f] %v487_v33 }
  0xab   :  { %516 = vst.msk [vmem:[%s881_s3 + $0x98] sm:$0x1f] %vm275_vm1, %v488_v35 }

</bundles_post_ra>
